<compile_context>
chip_gen: v6e
topology: v6e:2x2x1
jax: 0.10.0
libtpu: 0.0.40
codegen_flags: <defaults>
</compile_context>

<pallas_src>
import functools

import jax
import jax.numpy as jnp
import numpy as np
from jax.experimental import pallas as pl
from jax.experimental.pallas import tpu as pltpu

_NEG_BIG = -1e30    # masked / padded "negative" entries -> relu(...) == 0
_POS_BIG = 1e30     # padded pos rows -> relu(...) == 0


def _round_up(x, m):
    return ((x + m - 1) // m) * m


def _vmem_limit_bytes():
    """Generation-aware scoped-VMEM limit (v5e/v6e: ~96 MiB, v7x: ~48 MiB)."""
    cap = 64 * 1024 * 1024
    try:
        info = pltpu.get_tpu_info()
        cap = int(getattr(info, "vmem_capacity_bytes", cap))
    except Exception:
        pass
    return int(max(32 * 1024 * 1024, min(0.75 * cap, 112 * 1024 * 1024)))


# --------------------------------------------------------------------------- #
# 1) fused rank kernel: pos extraction + pairwise hinge, grid (pos x neg)      #
# --------------------------------------------------------------------------- #
def _rank_kernel(score_rows_ref, label_rows_ref, score_neg_ref, label_neg_ref,
                 out_ref, pos_ref, acc_ref,
                 *, margin, batch, tile_pos, n_lane_groups):
    i = pl.program_id(0)
    j = pl.program_id(1)

    # Per pos-chunk init (j == 0): extract pos_i for this block of rows, mask
    # padded rows with +BIG so their hinge is exactly 0, zero the lane-dense
    # accumulator.
    @pl.when(j == 0)
    def _():
        s = -score_rows_ref[...].astype(jnp.float32)                # (tp, L)
        pm = label_rows_ref[...].astype(jnp.float32) > 0.5
        # exactly one positive per row (reference assumption) -> sum picks it
        pos = jnp.sum(jnp.where(pm, s, 0.0), axis=1, keepdims=True)  # (tp, 1)
        rows = i * tile_pos + jax.lax.broadcasted_iota(
            jnp.int32, (tile_pos, 1), 0)
        pos_ref[...] = jnp.where(rows < batch, pos, jnp.float32(_POS_BIG))
        acc_ref[...] = jnp.zeros_like(acc_ref)

    # t = where(neg, -score + margin, -BIG) computed on the fly (no prep pass,
    # no HBM "t" intermediate).  Padded lanes carry label = 1.0 -> -BIG.
    sc = score_neg_ref[...].astype(jnp.float32)                      # (1, tn)
    lb = label_neg_ref[...].astype(jnp.float32)                      # (1, tn)
    t = jnp.where(lb < 0.5, jnp.float32(margin) - sc, jnp.float32(_NEG_BIG))

    pos = pos_ref[...]                                               # (tp, 1)

    # Lane-dense partial sums: static loop over 128-lane groups keeps every
    # intermediate at (tile_pos, 128) (vreg-aligned slices, VPU only); the
    # expensive cross-lane reduce + narrow store are deferred to the last step.
    partial = jnp.zeros((tile_pos, 128), jnp.float32)
    for g in range(n_lane_groups):
        tg = t[:, g * 128:(g + 1) * 128]                             # (1, 128)
        partial = partial + jnp.maximum(tg - pos, 0.0)               # (tp, 128)
    acc_ref[...] += partial

    @pl.when(j == pl.num_programs(1) - 1)
    def _():
        out_ref[...] = jnp.sum(acc_ref[...], axis=1, keepdims=True)  # (tp, 1)


# --------------------------------------------------------------------------- #
# 2) label (gram) loss: one MXU matmul per row chunk, block-diagonal mask,     #
#    triu symmetry:  sum(relu(triu(G,1))) = (sum(relu(G_blkdiag)) - sum(x^2))/2 #
# --------------------------------------------------------------------------- #
def _lab_kernel(a_ref, x_ref, out_ref, *, tm, seq_len, use_bf16):
    i = pl.program_id(0)
    a = a_ref[...].astype(jnp.float32)                               # (tm, K)
    x = x_ref[...].astype(jnp.float32)                               # (M_pad, K)
    if use_bf16:
        am = a.astype(jnp.bfloat16)
        xm = x.astype(jnp.bfloat16)
    else:
        am, xm = a, x
    # G_block = A @ X^T  on the MXU, f32 accumulation.
    g = jax.lax.dot_general(am, xm, (((1,), (1,)), ((), ())),
                            preferred_element_type=jnp.float32)      # (tm, M_pad)

    rows = i * tm + jax.lax.broadcasted_iota(jnp.int32, (tm, 1), 0)
    cols = jax.lax.broadcasted_iota(jnp.int32, (1, g.shape[1]), 1)
    same_batch = (rows // seq_len) == (cols // seq_len)              # (tm, M_pad)

    relu_sum = jnp.sum(jnp.where(same_batch, jnp.maximum(g, 0.0), 0.0),
                       axis=1, keepdims=True)                        # (tm, 1)
    sq_sum = jnp.sum(a * a, axis=1, keepdims=True)                   # (tm, 1)
    # Zero-padded rows contribute exactly 0 to both terms.
    out_ref[...] = 0.5 * (relu_sum - sq_sum)


# --------------------------------------------------------------------------- #
# 3) combine: negative count + final scalar reductions / divisions             #
# --------------------------------------------------------------------------- #
def _combine_kernel(rank_ref, lab_ref, label_flat_ref, out_ref,
                    *, batch, lab_denom):
    # Padded lanes carry label = 1.0 -> never counted as negatives.
    negcnt = jnp.sum((label_flat_ref[...] < 0.5).astype(jnp.float32))
    rank_sum = jnp.sum(rank_ref[...])
    lab_sum = jnp.sum(lab_ref[...])
    # Matches the reference: no guard for negcnt == 0 (that case fails there too).
    rank_loss = rank_sum / (negcnt * jnp.float32(batch))
    lab_loss = lab_sum / jnp.float32(lab_denom)
    out_ref[...] = jnp.reshape(rank_loss + jnp.float32(0.005) * lab_loss, (1, 1))


# --------------------------------------------------------------------------- #
# wrapper                                                                      #
# --------------------------------------------------------------------------- #
def margin_loss(score, label, seq_vec, lab_vec=None, margin=1.0,
                *, tile_pos=128, tile_neg=8192, lab_tile=256,
                use_bf16_gram=False):
    """Pallas TPU forward of MarginLoss.  lab_vec is unused (API parity only)."""
    del lab_vec
    score = jnp.asarray(score, jnp.float32)
    label = jnp.asarray(label, jnp.float32)
    seq_vec = jnp.asarray(seq_vec, jnp.float32)
    B, L = score.shape
    B2, J, K = seq_vec.shape
    BL = B * L

    vmem_limit = _vmem_limit_bytes()
    vmem = pl.BlockSpec(memory_space=pltpu.MemorySpace.VMEM)

    # ---- tile selection (rank) ----------------------------------------------
    tile_pos = max(8, _round_up(min(tile_pos, _round_up(B, 8)), 8))
    if _round_up(B, tile_pos) // tile_pos < 2 and B > 8:
        # Guarantee >= 2 "parallel" pos chunks so v7x's second TC is used.
        tile_pos = _round_up(-(-B // 2), 8)
    b_pad = _round_up(B, tile_pos)

    tile_neg = max(128, _round_up(min(tile_neg, _round_up(BL, 128)), 128))
    n_pad = _round_up(BL, tile_neg)

    # ---- layout plumbing (cheap, wrapper-side) -------------------------------
    score_rows, label_rows = score, label
    if b_pad > B:
        score_rows = jnp.pad(score, ((0, b_pad - B), (0, 0)))
        label_rows = jnp.pad(label, ((0, b_pad - B), (0, 0)))
    score_flat = score.reshape(1, BL)
    label_flat = label.reshape(1, BL)
    if n_pad > BL:
        score_flat = jnp.pad(score_flat, ((0, 0), (0, n_pad - BL)))
        label_flat = jnp.pad(label_flat, ((0, 0), (0, n_pad - BL)),
                             constant_values=1.0)   # pad -> "positive" -> ignored

    # ---- fused rank loss: grid (pos chunks x neg chunks) ---------------------
    rank_rows = pl.pallas_call(
        functools.partial(_rank_kernel, margin=float(margin), batch=B,
                          tile_pos=tile_pos, n_lane_groups=tile_neg // 128),
        out_shape=jax.ShapeDtypeStruct((b_pad, 1), jnp.float32),
        grid=(b_pad // tile_pos, n_pad // tile_neg),
        in_specs=[pl.BlockSpec((tile_pos, L), lambda i, j: (i, 0)),
                  pl.BlockSpec((tile_pos, L), lambda i, j: (i, 0)),
                  pl.BlockSpec((1, tile_neg), lambda i, j: (0, j)),
                  pl.BlockSpec((1, tile_neg), lambda i, j: (0, j))],
        out_specs=pl.BlockSpec((tile_pos, 1), lambda i, j: (i, 0)),
        scratch_shapes=[pltpu.VMEM((tile_pos, 1), jnp.float32),
                        pltpu.VMEM((tile_pos, 128), jnp.float32)],
        compiler_params=pltpu.CompilerParams(
            dimension_semantics=("parallel", "arbitrary"),
            vmem_limit_bytes=vmem_limit),
    )(score_rows, label_rows, score_flat, label_flat)

    # ---- label (gram) loss: one matmul per row chunk --------------------------
    M = B2 * J
    lab_tile = max(8, _round_up(min(lab_tile, _round_up(M, 8)), 8))
    if _round_up(M, lab_tile) // lab_tile < 2 and M > 8:
        lab_tile = _round_up(-(-M // 2), 8)          # 2 chunks -> v7x megacore
    m_pad = _round_up(M, lab_tile)
    x = seq_vec.reshape(M, K)
    if m_pad > M:
        x = jnp.pad(x, ((0, m_pad - M), (0, 0)))

    lab_rows = pl.pallas_call(
        functools.partial(_lab_kernel, tm=lab_tile, seq_len=J,
                          use_bf16=use_bf16_gram),
        out_shape=jax.ShapeDtypeStruct((m_pad, 1), jnp.float32),
        grid=(m_pad // lab_tile,),
        in_specs=[pl.BlockSpec((lab_tile, K), lambda i: (i, 0)),
                  pl.BlockSpec((m_pad, K), lambda i: (0, 0))],
        out_specs=pl.BlockSpec((lab_tile, 1), lambda i: (i, 0)),
        compiler_params=pltpu.CompilerParams(
            dimension_semantics=("parallel",),
            vmem_limit_bytes=vmem_limit),
    )(x, x)

    # ---- combine -------------------------------------------------------------
    loss = pl.pallas_call(
        functools.partial(_combine_kernel, batch=B, lab_denom=B2 * J * J),
        out_shape=jax.ShapeDtypeStruct((1, 1), jnp.float32),
        in_specs=[vmem, vmem, vmem],
        out_specs=vmem,
        compiler_params=pltpu.CompilerParams(vmem_limit_bytes=vmem_limit),
    )(rank_rows, lab_rows, label_flat)
    return loss[0, 0]


# --------------------------------------------------------------------------- #
# pure-numpy reference mirroring the PyTorch forward                           #
# --------------------------------------------------------------------------- #
def margin_loss_ref(score, label, seq_vec, margin):
    score = np.asarray(score, np.float32)
    label = np.asarray(label, np.float32)
    seq_vec = np.asarray(seq_vec, np.float32)
    batch = score.shape[0]
    s = -score
    pos = s[label > 0.5].reshape(batch, -1)                  # (B, 1)
    neg = s[label < 0.5].reshape(1, -1).repeat(batch, 0)     # (B, N)
    neg_num = neg.shape[1]
    pos = np.repeat(pos, neg_num, axis=1)
    rank = np.maximum(-pos + neg + margin, 0.0)
    rank_loss = rank.sum() / neg_num / batch
    gram = np.einsum('ijk,imk->ijm', seq_vec, seq_vec)
    lab_loss = np.maximum(np.triu(gram, 1), 0.0).mean()
    return rank_loss + lab_loss * 0.005


if __name__ == "__main__":
    margin = 1.0

    # --- small shapes implied by the module -----------------------------------
    B, L = 2, 8        # batch, num labels
    J, K = 8, 32       # seq length, hidden
    key = jax.random.PRNGKey(0)
    k1, k2, k3, k4 = jax.random.split(key, 4)
    score = jax.random.normal(k1, (B, L), dtype=jnp.float32)
    pos_idx = jax.random.randint(k2, (B,), 0, L)   # exactly one positive / row
    label = jnp.zeros((B, L), jnp.float32).at[jnp.arange(B), pos_idx].set(1.0)
    seq_vec = jax.random.normal(k3, (B, J, K), dtype=jnp.float32)
    lab_vec = jax.random.normal(k4, (L, K), dtype=jnp.float32)   # unused

    loss = jax.block_until_ready(margin_loss(score, label, seq_vec, lab_vec, margin))
    ref = margin_loss_ref(np.array(score), np.array(label), np.array(seq_vec), margin)
    np.testing.assert_allclose(np.array(loss), ref, rtol=1e-5, atol=1e-5)

    # --- larger case exercising multi-chunk grids + padding --------------------
    Bx, Lx = 20, 40
    k5, k6, k7 = jax.random.split(jax.random.PRNGKey(1), 3)
    score2 = jax.random.normal(k5, (Bx, Lx), dtype=jnp.float32)
    pos_idx2 = jax.random.randint(k6, (Bx,), 0, Lx)
    label2 = jnp.zeros((Bx, Lx), jnp.float32).at[jnp.arange(Bx), pos_idx2].set(1.0)
    seq_vec2 = jax.random.normal(k7, (Bx, J, K), dtype=jnp.float32)
    loss2 = jax.block_until_ready(
        margin_loss(score2, label2, seq_vec2, None, margin))
    ref2 = margin_loss_ref(np.array(score2), np.array(label2), np.array(seq_vec2), margin)
    np.testing.assert_allclose(np.array(loss2), ref2, rtol=1e-4, atol=1e-4)

    print("KERNEL_OK")
</pallas_src>

<mosaic_0001>
module attributes {stable_mosaic.version = 11 : i64} {
  func.func @_rank_kernel(%arg0: i32, %arg1: i32, %arg2: memref<8x8xf32, #tpu.memory_space<vmem>>, %arg3: memref<8x8xf32, #tpu.memory_space<vmem>>, %arg4: memref<1x128xf32, #tpu.memory_space<vmem>>, %arg5: memref<1x128xf32, #tpu.memory_space<vmem>>, %arg6: memref<8x1xf32, #tpu.memory_space<vmem>>, %arg7: memref<8x1xf32, #tpu.memory_space<vmem>>, %arg8: memref<8x128xf32, #tpu.memory_space<vmem>>) attributes {dimension_semantics = [#tpu.dimension_semantics<parallel>, #tpu.dimension_semantics<arbitrary>], iteration_bounds = array<i64: 1, 1>, scalar_prefetch = 0 : i64, scratch_operands = 2 : i64, tpu.core_type = #tpu.core_type<tc>, window_params = [{transform_indices = @transform_0, window_bounds = array<i64: 8, 8>}, {transform_indices = @transform_1, window_bounds = array<i64: 8, 8>}, {transform_indices = @transform_2, window_bounds = array<i64: 1, 128>}, {transform_indices = @transform_3, window_bounds = array<i64: 1, 128>}, {transform_indices = @transform_4, window_bounds = array<i64: 8, 1>}]} {
    %c0_i32 = arith.constant 0 : i32
    %0 = arith.cmpi eq, %arg1, %c0_i32 : i32
    %1 = arith.extui %0 : i1 to i32
    %c0_i32_0 = arith.constant 0 : i32
    %2 = arith.cmpi ne, %1, %c0_i32_0 : i32
    scf.if %2 {
      %c0_16 = arith.constant 0 : index
      %c0_17 = arith.constant 0 : index
      %25 = vector.load %arg2[%c0_16, %c0_17] : memref<8x8xf32, #tpu.memory_space<vmem>>, vector<8x8xf32>
      %cst_18 = arith.constant 0.000000e+00 : f32
      %26 = vector.broadcast %cst_18 : f32 to vector<8x8xf32>
      %27 = arith.subf %26, %25 : vector<8x8xf32>
      %c0_19 = arith.constant 0 : index
      %c0_20 = arith.constant 0 : index
      %28 = vector.load %arg3[%c0_19, %c0_20] : memref<8x8xf32, #tpu.memory_space<vmem>>, vector<8x8xf32>
      %cst_21 = arith.constant 5.000000e-01 : f32
      %29 = vector.broadcast %cst_21 : f32 to vector<8x8xf32>
      %30 = arith.cmpf ogt, %28, %29 : vector<8x8xf32>
      %cst_22 = arith.constant 0.000000e+00 : f32
      %31 = vector.broadcast %cst_22 : f32 to vector<8x8xf32>
      %32 = arith.select %30, %27, %31 : vector<8x8xi1>, vector<8x8xf32>
      %cst_23 = arith.constant dense<0.000000e+00> : vector<8xf32>
      %33 = vector.multi_reduction <add>, %32, %cst_23 [1] : vector<8x8xf32> to vector<8xf32>
      %34 = vector.shape_cast %33 : vector<8xf32> to vector<8x1xf32>
      %c8_i32 = arith.constant 8 : i32
      %35 = arith.muli %arg0, %c8_i32 : i32
      %36 = tpu.iota {dimensions = array<i32: 0>} : vector<8x1xi32>
      %37 = vector.broadcast %35 : i32 to vector<8x1xi32>
      %38 = arith.addi %37, %36 : vector<8x1xi32>
      %c2_i32 = arith.constant 2 : i32
      %39 = vector.broadcast %c2_i32 : i32 to vector<8x1xi32>
      %40 = arith.cmpi slt, %38, %39 : vector<8x1xi32>
      %cst_24 = arith.constant 1.000000e+30 : f32
      %41 = vector.broadcast %cst_24 : f32 to vector<8x1xf32>
      %42 = arith.select %40, %34, %41 : vector<8x1xi1>, vector<8x1xf32>
      %c0_25 = arith.constant 0 : index
      %c0_26 = arith.constant 0 : index
      %43 = vector.load %arg7[%c0_25, %c0_26] : memref<8x1xf32, #tpu.memory_space<vmem>>, vector<8x1xf32>
      tpu.vector_store %arg7[%c0_25, %c0_26], %42 {strides = array<i32>} : memref<8x1xf32, #tpu.memory_space<vmem>>, vector<8x1xf32>,
      %cst_27 = arith.constant 0.000000e+00 : f32
      %44 = vector.broadcast %cst_27 : f32 to vector<8x128xf32>
      %c0_28 = arith.constant 0 : index
      %c0_29 = arith.constant 0 : index
      %45 = vector.load %arg8[%c0_28, %c0_29] : memref<8x128xf32, #tpu.memory_space<vmem>>, vector<8x128xf32>
      tpu.vector_store %arg8[%c0_28, %c0_29], %44 {strides = array<i32>} : memref<8x128xf32, #tpu.memory_space<vmem>>, vector<8x128xf32>,
    } else {
    }
    %c0 = arith.constant 0 : index
    %c0_1 = arith.constant 0 : index
    %3 = vector.load %arg4[%c0, %c0_1] : memref<1x128xf32, #tpu.memory_space<vmem>>, vector<1x128xf32>
    %c0_2 = arith.constant 0 : index
    %c0_3 = arith.constant 0 : index
    %4 = vector.load %arg5[%c0_2, %c0_3] : memref<1x128xf32, #tpu.memory_space<vmem>>, vector<1x128xf32>
    %cst = arith.constant 5.000000e-01 : f32
    %5 = vector.broadcast %cst : f32 to vector<1x128xf32>
    %6 = arith.cmpf olt, %4, %5 : vector<1x128xf32>
    %cst_4 = arith.constant 1.000000e+00 : f32
    %7 = vector.broadcast %cst_4 : f32 to vector<1x128xf32>
    %8 = arith.subf %7, %3 : vector<1x128xf32>
    %cst_5 = arith.constant -1.000000e+30 : f32
    %9 = vector.broadcast %cst_5 : f32 to vector<1x128xf32>
    %10 = arith.select %6, %8, %9 : vector<1x128xi1>, vector<1x128xf32>
    %c0_6 = arith.constant 0 : index
    %c0_7 = arith.constant 0 : index
    %11 = vector.load %arg7[%c0_6, %c0_7] : memref<8x1xf32, #tpu.memory_space<vmem>>, vector<8x1xf32>
    %cst_8 = arith.constant 0.000000e+00 : f32
    %12 = vector.broadcast %cst_8 : f32 to vector<8x128xf32>
    %13 = vector.broadcast %10 : vector<1x128xf32> to vector<8x128xf32>
    %14 = vector.broadcast %11 : vector<8x1xf32> to vector<8x128xf32>
    %15 = arith.subf %13, %14 : vector<8x128xf32>
    %cst_9 = arith.constant 0.000000e+00 : f32
    %16 = vector.broadcast %cst_9 : f32 to vector<8x128xf32>
    %17 = arith.maximumf %15, %16 : vector<8x128xf32>
    %18 = arith.addf %12, %17 : vector<8x128xf32>
    %c0_10 = arith.constant 0 : index
    %c0_11 = arith.constant 0 : index
    %19 = vector.load %arg8[%c0_10, %c0_11] : memref<8x128xf32, #tpu.memory_space<vmem>>, vector<8x128xf32>
    %20 = arith.addf %19, %18 : vector<8x128xf32>
    %c0_12 = arith.constant 0 : index
    %c0_13 = arith.constant 0 : index
    %21 = vector.load %arg8[%c0_12, %c0_13] : memref<8x128xf32, #tpu.memory_space<vmem>>, vector<8x128xf32>
    tpu.vector_store %arg8[%c0_12, %c0_13], %20 {strides = array<i32>} : memref<8x128xf32, #tpu.memory_space<vmem>>, vector<8x128xf32>,
    %c0_i32_14 = arith.constant 0 : i32
    %22 = arith.cmpi eq, %arg1, %c0_i32_14 : i32
    %23 = arith.extui %22 : i1 to i32
    %c0_i32_15 = arith.constant 0 : i32
    %24 = arith.cmpi ne, %23, %c0_i32_15 : i32
    scf.if %24 {
      %c0_16 = arith.constant 0 : index
      %c0_17 = arith.constant 0 : index
      %25 = vector.load %arg8[%c0_16, %c0_17] : memref<8x128xf32, #tpu.memory_space<vmem>>, vector<8x128xf32>
      %cst_18 = arith.constant dense<0.000000e+00> : vector<8xf32>
      %26 = vector.multi_reduction <add>, %25, %cst_18 [1] : vector<8x128xf32> to vector<8xf32>
      %27 = vector.shape_cast %26 : vector<8xf32> to vector<8x1xf32>
      %c0_19 = arith.constant 0 : index
      %c0_20 = arith.constant 0 : index
      %28 = vector.load %arg6[%c0_19, %c0_20] : memref<8x1xf32, #tpu.memory_space<vmem>>, vector<8x1xf32>
      tpu.vector_store %arg6[%c0_19, %c0_20], %27 {strides = array<i32>} : memref<8x1xf32, #tpu.memory_space<vmem>>, vector<8x1xf32>,
    } else {
    }
    return
  }
  func.func @transform_0(%arg0: i32, %arg1: i32) -> (i32, i32) {
    %c0_i32 = arith.constant 0 : i32
    %c0_i32_0 = arith.constant 0 : i32
    return %arg0, %c0_i32 : i32, i32
  }
  func.func @transform_1(%arg0: i32, %arg1: i32) -> (i32, i32) {
    %c0_i32 = arith.constant 0 : i32
    %c0_i32_0 = arith.constant 0 : i32
    return %arg0, %c0_i32 : i32, i32
  }
  func.func @transform_2(%arg0: i32, %arg1: i32) -> (i32, i32) {
    %c0_i32 = arith.constant 0 : i32
    %c0_i32_0 = arith.constant 0 : i32
    return %c0_i32, %arg1 : i32, i32
  }
  func.func @transform_3(%arg0: i32, %arg1: i32) -> (i32, i32) {
    %c0_i32 = arith.constant 0 : i32
    %c0_i32_0 = arith.constant 0 : i32
    return %c0_i32, %arg1 : i32, i32
  }
  func.func @transform_4(%arg0: i32, %arg1: i32) -> (i32, i32) {
    %c0_i32 = arith.constant 0 : i32
    %c0_i32_0 = arith.constant 0 : i32
    return %arg0, %c0_i32 : i32, i32
  }
}

</mosaic_0001>

<bundles_post_ra>
// kernel: tpu_custom_call.1
= control target key start
LH: loop header
LB: loop body
LE: loop exit
PB: predicated region body
PF: predicated region fallthrough
CT: control target
= control target key end

     0   :  { %9 = vsyncpa [#allocation5], 0  ;;  %s194_s0 = inlined_call_operand.hbm [shape: f32[8,8], index: 0, kind: input, shape index: {}]   ;;  %s195_s1 = inlined_call_operand.hbm [shape: f32[8,8], index: 1, kind: input, shape index: {}]   ;;  %s196_s2 = inlined_call_operand.vmem [shape: f32[1,128], index: 2, kind: input, shape index: {}]   ;;  %s197_s3 = inlined_call_operand.vmem [shape: f32[1,128], index: 3, kind: input, shape index: {}]   ;;  %s198_s4 = inlined_call_operand.vmem [shape: f32[8,1], index: 4, kind: output, shape index: {}]  }
   0x1   :  { %10 = vsyncpa [#allocation7], 0  ;;  %s149_s15 = smov [#allocation4]   ;;  %s150_s17 = smov [#allocation6]  }
   0x2   :  { %s17_s16 = sshll.u32 %s149_s15, 4  ;;  %s27_s18 = sshll.u32 %s150_s17, 4  ;;  %s18_s16 = int_to_ptr.vmem [resolvable:$true] %s17_s16  ;;  %s28_s18 = int_to_ptr.vmem [resolvable:$true] %s27_s18 }
   0x3   :  { %s113_s19 = scalar_lea.vmem %s18_s16, 128  ;;  %p118_p1 = scmp.lt.s32.totalorder %s18_s16, %s18_s16 }
   0x4   :  { %p114_p0 = scmp.ne.s32.totalorder %s18_s16, %s113_s19  ;;  %p119_p2 = scmp.lt.s32.totalorder %s113_s19, %s113_s19 }
   0x6   :  { %p120_p3 = por %p119_p2, %p118_p1 }
   0x8   :  { %p121_p4 = pnand %p120_p3, %p114_p0 }
   0xa   :  { %124 = shalt.err (!%p121_p4)
}
   0xb   :  { %20 = dma.hbm_to_vmem [thread:$0]  %s194_s0, 128, %s18_s16, [#allocation5]  }
   0xc   :  { %s133_s22 = scalar_lea.vmem %s28_s18, 128  ;;  %p138_p6 = scmp.lt.s32.totalorder %s28_s18, %s28_s18 }
   0xd   :  { %p134_p5 = scmp.ne.s32.totalorder %s28_s18, %s133_s22  ;;  %p139_p7 = scmp.lt.s32.totalorder %s133_s22, %s133_s22 }
   0xf   :  { %p140_p8 = por %p139_p7, %p138_p6 }
  0x11   :  { %p141_p9 = pnand %p140_p8, %p134_p5 }
  0x13   :  { %144 = shalt.err (!%p141_p9)
}
  0x14   :  { %30 = dma.hbm_to_vmem [thread:$0]  %s195_s1, 128, %s28_s18, [#allocation7]  }
  0x15   :  { %145 = dma.done.wait [#allocation5], 128  }
  0x16   :  { %146 = vsyncadd [#allocation5], 4294967168 }
  0x17   :  { %147 = dma.done.wait [#allocation7], 128  }
  0x18   :  { %148 = vsyncadd [#allocation7], 4294967168  ;;  %v45_v0 = vld [vmem:[#allocation4] sm:$0xff]  ;;  %v47_v1 = vld [vmem:[#allocation6] sm:$0xff]  ;;  %vm50_vm1 = vcmask 64512   ;;  %v151_v5 = vmov 0   ;;  %v55_v6 = vlaneseq }
  0x19   :  { %v46_v2 = vsub.f32 0.0, %v45_v0  ;;  %vm48_vm0 = vcmp.gt.f32.partialorder %v47_v1, 0.5  ;;  %104 = vset.pattern.permute.xlu0 %v151_v5  ;;  %vm61_vm3 = vcmask 7168   ;;  %v64_v11 = vld [vmem:[%s196_s2] sm:$0x1] }
  0x1a   :  { %v56_v7 = vshrl.u32 %v55_v6, 7  ;;  %v65_v12 = vld [vmem:[%s197_s3] sm:$0x1]  ;;  %v67_v13 = vsub.f32 1.0, %v64_v11 }
  0x1b   :  { %v49_v3 = vsel %vm48_vm0, %v46_v2, 0.0  ;;  %vm66_vm4 = vcmp.lt.f32.partialorder %v65_v12, 0.5 }
  0x1c   :  { %v51_v4 = vsel %vm50_vm1, %v49_v3, 0.0  ;;  %vm59_vm2 = vcmp.lt.s32.totalorder %v56_v7, 2  ;;  %v73_v14 = vsub.s32 0, %v56_v7  ;;  %v68_v15 = vsel %vm66_vm4, %v67_v13, -1e+30 }
  0x1d   :  { %52 = vadd.xlane.f32.xlu0 %v51_v4 }
  0x1e   :  { %v74_v16 = vrot.slane %v68_v15, %v73_v14 }
  0xa6   :  { %v53_v8 = vpop.xlane.xlu0 %52 }
  0xa7   :  { %v60_v9 = vsel %vm59_vm2, %v53_v8, 1e+30 }
  0xa8   :  { %62 = vst.msk [vmem:[#allocation2] sm:$0xff] %vm61_vm3, %v60_v9 }
  0xaf   :  { %v69_v10 = vld [vmem:[#allocation2] sm:$0xff] }
  0xb0   :  { %78 = vperm.xlu0 %104, %v69_v10  }
 0x12b   :  { %v79_v17 = vpop.permute.xlu0 %78 }
 0x12c   :  { %v81_v18 = vsub.f32 %v74_v16, %v79_v17 }
 0x12e   :  { %v82_v19 = vmax.f32 %v81_v18, 0.0 }
 0x130   :  { %91 = vadd.xlane.f32.xlu1 %v82_v19 }
 0x1b9   :  { %v92_v20 = vpop.xlane.xlu1 %91 }
 0x1ba   :  { %94 = vst.msk [vmem:[%s198_s4] sm:$0xff] %vm61_vm3, %v92_v20 }
 0x1bb   :  { %99 = vsyncpa [#allocation5], 1 }
 0x1bc   :  { %100 = vsyncpa [#allocation7], 1 }

</bundles_post_ra>
